<compile_context>
chip_gen: v6e
topology: v6e:2x2x1
jax: 0.10.0
libtpu: 0.0.40
codegen_flags: <defaults>
</compile_context>

<pallas_src>
import functools
import math

import jax
import jax.numpy as jnp
from jax import lax
from jax.experimental import pallas as pl
from jax.experimental.pallas import tpu as pltpu


def _mpa_kernel(cls_ref, wqkv_ref, bqkv_ref, bias_ref, out_ref, *,
                threshold, compute_dtype):
    """One grid step = one super-block of Bb dialogues (R = Bb*N rows)."""
    h = wqkv_ref.shape[0]
    bb, n, _ = cls_ref.shape
    r = bb * n

    # Fused Q/K/V projection for the whole super-block:
    # (R, H) x (H, 3H) -> (R, 3H), a single MXU pass.  The (Bb, N, H)->(R, H)
    # reshape only merges major dims (N is a sublane multiple) so it is free.
    u = cls_ref[...].reshape(r, h)
    qkv = lax.dot_general(u, wqkv_ref[...],
                          (((1,), (0,)), ((), ())),
                          preferred_element_type=jnp.float32)
    qkv = qkv + bqkv_ref[...]                       # f32 bias add
    q = qkv[:, 0 * h:1 * h]
    k = qkv[:, 1 * h:2 * h]
    v = qkv[:, 2 * h:3 * h]

    # Scaled scores for the whole super-block; contract the lane-dense H axis
    # of both operands (the implicit transpose of k is one small XLU tile at
    # these sizes -- acceptable per review note #9).
    scale = jnp.float32(1.0 / math.sqrt(h))
    scores = lax.dot_general(q.astype(compute_dtype), k.astype(compute_dtype),
                             (((1,), (1,)), ((), ())),
                             preferred_element_type=jnp.float32) * scale

    # Single additive mask precomputed in the wrapper: fuses same-speaker,
    # |i-j| <= max_interaction_range AND the block-diagonal same-dialogue
    # test, so cross-dialogue pairs contribute exactly zero probability.
    scores = scores + bias_ref[...]

    # Numerically stable softmax.  Safe from all-masked rows: the diagonal
    # (self, same speaker, |i-i| = 0 <= range) is always unmasked.
    m = jnp.max(scores, axis=-1, keepdims=True)
    e = jnp.exp(scores - m)
    d = jnp.sum(e, axis=-1, keepdims=True)
    probs = e / d                                   # exact divide; d is (R, 1)

    # masked_fill(probs < attention_threshold, 0)  (no renormalization).
    probs = jnp.where(probs < threshold, jnp.float32(0.0), probs)

    # Context vectors: (R, R) x (R, H) -> (R, H).
    ctx = lax.dot_general(probs.astype(compute_dtype), v.astype(compute_dtype),
                          (((1,), (0,)), ((), ())),
                          preferred_element_type=jnp.float32)
    out_ref[...] = ctx.reshape(bb, n, h)


def _pick_dialogs_per_step(b, n, target_rows=128):
    """Largest divisor of b whose row super-block stays within ~one MXU pass,
    preferring >= 2 grid steps so both v7x TensorCores get work."""
    if b <= 1:
        return 1
    divisors = [d for d in range(1, b + 1) if b % d == 0]
    cands = [d for d in divisors if d * n <= max(target_rows, n)]
    if not cands:
        return 1
    two_step = [d for d in cands if b // d >= 2]
    return max(two_step) if two_step else max(cands)


def multiparty_attention(hidden_states, speaker_ids, wq, bq, wk, bk, wv, bv,
                         *, max_interaction_range=2, attention_threshold=0.1,
                         compute_dtype=jnp.float32, dialogs_per_step=None):
    """hidden_states: (B, N, S, H) or (N, S, H) encoder last_hidden_state;
    speaker_ids: (B, N) or (N,).  Weights are PyTorch-convention [out, in]."""
    assert max_interaction_range >= 0   # keeps the diagonal unmasked (no NaN rows)
    squeeze = hidden_states.ndim == 3
    if squeeze:
        hidden_states = hidden_states[None]
        speaker_ids = speaker_ids[None]

    b, n, _, h = hidden_states.shape

    # CLS slice, pre-cast to the MXU compute dtype (no per-step in-kernel cast).
    # At real encoder sizes this slice could be folded into the CLS BlockSpec
    # (index seq position 0 straight out of last_hidden_state); kept as a
    # wrapper slice here so every block stays trivially (8,128)-tile legal.
    cls = hidden_states[:, :, 0, :].astype(compute_dtype)        # (B, N, H)

    # Number of dialogues folded into one grid step (row super-block).
    bb = dialogs_per_step or _pick_dialogs_per_step(b, n)
    assert b % bb == 0, "dialogs_per_step must divide the dialogue batch"
    g = b // bb
    r = bb * n

    # Pre-transpose + pack Wq/Wk/Wv -> one (H, 3H) panel, (1, 3H) f32 bias.
    w_qkv = jnp.concatenate([wq.T, wk.T, wv.T], axis=1).astype(compute_dtype)
    b_qkv = jnp.concatenate([bq, bk, bv]).reshape(1, 3 * h).astype(jnp.float32)

    # Combined additive mask, one (R, R) slab per super-block:
    #   allow[i, j] = same dialogue AND same speaker AND |utt_i - utt_j| <= range
    sp = speaker_ids.astype(jnp.int32).reshape(g, r)             # (G, R)
    pos = jnp.arange(r, dtype=jnp.int32)
    dlg = pos // n
    utt = pos % n
    same_speaker = sp[:, :, None] == sp[:, None, :]              # (G, R, R)
    same_dialog = (dlg[:, None] == dlg[None, :])[None]           # (1, R, R)
    in_range = (jnp.abs(utt[:, None] - utt[None, :])
                <= max_interaction_range)[None]                  # (1, R, R)
    allow = same_speaker & same_dialog & in_range
    bias = jnp.where(allow, 0.0, -1e9).astype(jnp.float32)       # (G, R, R)

    kernel = functools.partial(_mpa_kernel,
                               threshold=float(attention_threshold),
                               compute_dtype=compute_dtype)

    out = pl.pallas_call(
        kernel,
        out_shape=jax.ShapeDtypeStruct((b, n, h), jnp.float32),
        grid_spec=pltpu.PrefetchScalarGridSpec(
            num_scalar_prefetch=0,
            grid=(g,),
            in_specs=[
                pl.BlockSpec((bb, n, h), lambda i: (i, 0, 0)),    # CLS super-block
                pl.BlockSpec((h, 3 * h), lambda i: (0, 0)),       # resident W panel
                pl.BlockSpec((1, 3 * h), lambda i: (0, 0)),       # resident bias
                pl.BlockSpec((None, r, r), lambda i: (i, 0, 0)),  # additive mask
            ],
            out_specs=pl.BlockSpec((bb, n, h), lambda i: (i, 0, 0)),
        ),
        compiler_params=pltpu.CompilerParams(
            dimension_semantics=("parallel",)),
    )(cls, w_qkv, b_qkv, bias)

    return out[0] if squeeze else out


def _reference_one(cls, speaker_ids, wq, bq, wk, bk, wv, bv,
                   max_interaction_range, attention_threshold):
    q = cls @ wq.T + bq
    k = cls @ wk.T + bk
    v = cls @ wv.T + bv
    h = cls.shape[-1]
    scores = (q @ k.T) / (h ** 0.5)
    n = cls.shape[0]
    ii = jnp.arange(n)[:, None]
    jj = jnp.arange(n)[None, :]
    mask = (speaker_ids[:, None] == speaker_ids[None, :]) & (
        jnp.abs(ii - jj) <= max_interaction_range)
    scores = jnp.where(mask, scores, -1e9)
    probs = jax.nn.softmax(scores, axis=-1)
    probs = jnp.where(probs < attention_threshold, 0.0, probs)
    return probs @ v


if __name__ == "__main__":
    B, N, S, H = 4, 8, 16, 128      # dialogues, utterances, seq len, hidden
    MAX_RANGE = 2
    THRESH = 0.1

    key = jax.random.PRNGKey(0)
    ks = jax.random.split(key, 8)

    # Synthetic encoder output (stands in for last_hidden_state).
    hidden_states = jax.random.normal(ks[0], (B, N, S, H), dtype=jnp.float32)
    speaker_ids = jax.random.randint(ks[1], (B, N), 0, 3, dtype=jnp.int32)

    # Deterministic Linear parameters (PyTorch-style [out, in] weights).
    scale = 1.0 / (H ** 0.5)
    wq = jax.random.uniform(ks[2], (H, H), jnp.float32, -scale, scale)
    bq = jax.random.uniform(ks[3], (H,), jnp.float32, -scale, scale)
    wk = jax.random.uniform(ks[4], (H, H), jnp.float32, -scale, scale)
    bk = jax.random.uniform(ks[5], (H,), jnp.float32, -scale, scale)
    wv = jax.random.uniform(ks[6], (H, H), jnp.float32, -scale, scale)
    bv = jax.random.uniform(ks[7], (H,), jnp.float32, -scale, scale)

    # f32 path (exact check vs. pure-JAX reference).
    out = multiparty_attention(hidden_states, speaker_ids, wq, bq, wk, bk, wv, bv,
                               max_interaction_range=MAX_RANGE,
                               attention_threshold=THRESH)
    out = jax.block_until_ready(out)

    ref = jax.vmap(
        lambda hs, sp: _reference_one(hs[:, 0, :], sp, wq, bq, wk, bk, wv, bv,
                                      MAX_RANGE, THRESH))(hidden_states,
                                                          speaker_ids)
    assert out.shape == (B, N, H)
    assert jnp.allclose(out, ref, atol=1e-4, rtol=1e-4), "mismatch vs reference"

    # bf16-MXU path (f32 accumulation + f32 bias/mask/softmax math): exercised
    # for v6e/v7x throughput; only sanity-checked because bf16 rounding can
    # flip the hard attention_threshold cutoff relative to the f32 reference.
    out_bf16 = jax.block_until_ready(
        multiparty_attention(hidden_states, speaker_ids, wq, bq, wk, bk, wv, bv,
                             max_interaction_range=MAX_RANGE,
                             attention_threshold=THRESH,
                             compute_dtype=jnp.bfloat16))
    assert out_bf16.shape == (B, N, H)
    assert bool(jnp.all(jnp.isfinite(out_bf16)))

    print("KERNEL_OK")
</pallas_src>

<mosaic_0001>
module attributes {stable_mosaic.version = 11 : i64} {
  func.func @_mpa_kernel(%arg0: i32, %arg1: memref<2x8x128xf32, #tpu.memory_space<vmem>>, %arg2: memref<128x384xf32, #tpu.memory_space<vmem>>, %arg3: memref<1x384xf32, #tpu.memory_space<vmem>>, %arg4: memref<1x16x16xf32, #tpu.memory_space<vmem>>, %arg5: memref<2x8x128xf32, #tpu.memory_space<vmem>>) attributes {dimension_semantics = [#tpu.dimension_semantics<parallel>], iteration_bounds = array<i64: 2>, scalar_prefetch = 0 : i64, scratch_operands = 0 : i64, tpu.core_type = #tpu.core_type<tc>, window_params = [{transform_indices = @transform_0, window_bounds = array<i64: 2, 8, 128>}, {pipeline_mode = #tpu.pipeline_mode<synchronous>, transform_indices = @transform_1, window_bounds = array<i64: 128, 384>}, {pipeline_mode = #tpu.pipeline_mode<synchronous>, transform_indices = @transform_2, window_bounds = array<i64: 1, 384>}, {transform_indices = @transform_3, window_bounds = array<i64: 1, 16, 16>}, {transform_indices = @transform_4, window_bounds = array<i64: 2, 8, 128>}]} {
    %c0 = arith.constant 0 : index
    %c0_0 = arith.constant 0 : index
    %c0_1 = arith.constant 0 : index
    %0 = vector.load %arg1[%c0, %c0_0, %c0_1] : memref<2x8x128xf32, #tpu.memory_space<vmem>>, vector<2x8x128xf32>
    %1 = vector.shape_cast %0 : vector<2x8x128xf32> to vector<16x128xf32>
    %c0_2 = arith.constant 0 : index
    %c0_3 = arith.constant 0 : index
    %2 = vector.load %arg2[%c0_2, %c0_3] : memref<128x384xf32, #tpu.memory_space<vmem>>, vector<128x384xf32>
    %cst = arith.constant dense<0.000000e+00> : vector<16x384xf32>
    %3 = tpu.matmul %1, %2, %cst {dimension_numbers = #tpu.dot_dimension_numbers<[1], [0], [0], [1], [0, 0, 1, 1], [], []>} : vector<16x128xf32>, vector<128x384xf32>, vector<16x384xf32> -> vector<16x384xf32>
    %c0_4 = arith.constant 0 : index
    %c0_5 = arith.constant 0 : index
    %4 = vector.load %arg3[%c0_4, %c0_5] : memref<1x384xf32, #tpu.memory_space<vmem>>, vector<1x384xf32>
    %5 = vector.broadcast %4 : vector<1x384xf32> to vector<16x384xf32>
    %6 = arith.addf %3, %5 : vector<16x384xf32>
    %7 = vector.extract_strided_slice %6 {offsets = [0, 0], sizes = [16, 128], strides = [1, 1]} : vector<16x384xf32> to vector<16x128xf32>
    %8 = vector.extract_strided_slice %6 {offsets = [0, 128], sizes = [16, 128], strides = [1, 1]} : vector<16x384xf32> to vector<16x128xf32>
    %9 = vector.extract_strided_slice %6 {offsets = [0, 256], sizes = [16, 128], strides = [1, 1]} : vector<16x384xf32> to vector<16x128xf32>
    %cst_6 = arith.constant dense<0.000000e+00> : vector<16x16xf32>
    %10 = tpu.matmul %7, %8, %cst_6 {dimension_numbers = #tpu.dot_dimension_numbers<[1], [1], [0], [0], [0, 0, 1, 0], [], []>} : vector<16x128xf32>, vector<16x128xf32>, vector<16x16xf32> -> vector<16x16xf32>
    %cst_7 = arith.constant 0.0883883461 : f32
    %11 = vector.broadcast %cst_7 : f32 to vector<16x16xf32>
    %12 = arith.mulf %10, %11 : vector<16x16xf32>
    %c0_8 = arith.constant 0 : index
    %c0_9 = arith.constant 0 : index
    %c0_10 = arith.constant 0 : index
    %13 = vector.load %arg4[%c0_8, %c0_9, %c0_10] : memref<1x16x16xf32, #tpu.memory_space<vmem>>, vector<1x16x16xf32>
    %14 = vector.shape_cast %13 : vector<1x16x16xf32> to vector<16x16xf32>
    %15 = arith.addf %12, %14 : vector<16x16xf32>
    %cst_11 = arith.constant dense<0xFF800000> : vector<16xf32>
    %16 = vector.multi_reduction <maximumf>, %15, %cst_11 [1] : vector<16x16xf32> to vector<16xf32>
    %17 = vector.shape_cast %16 : vector<16xf32> to vector<16x1xf32>
    %18 = vector.broadcast %17 : vector<16x1xf32> to vector<16x16xf32>
    %19 = arith.subf %15, %18 : vector<16x16xf32>
    %20 = math.exp %19 : vector<16x16xf32>
    %cst_12 = arith.constant dense<0.000000e+00> : vector<16xf32>
    %21 = vector.multi_reduction <add>, %20, %cst_12 [1] : vector<16x16xf32> to vector<16xf32>
    %22 = vector.shape_cast %21 : vector<16xf32> to vector<16x1xf32>
    %23 = vector.broadcast %22 : vector<16x1xf32> to vector<16x16xf32>
    %24 = arith.divf %20, %23 : vector<16x16xf32>
    %cst_13 = arith.constant 1.000000e-01 : f32
    %25 = vector.broadcast %cst_13 : f32 to vector<16x16xf32>
    %26 = arith.cmpf olt, %24, %25 : vector<16x16xf32>
    %cst_14 = arith.constant 0.000000e+00 : f32
    %27 = vector.broadcast %cst_14 : f32 to vector<16x16xf32>
    %28 = arith.select %26, %27, %24 : vector<16x16xi1>, vector<16x16xf32>
    %cst_15 = arith.constant dense<0.000000e+00> : vector<16x128xf32>
    %29 = tpu.matmul %28, %9, %cst_15 {dimension_numbers = #tpu.dot_dimension_numbers<[1], [0], [0], [1], [0, 0, 1, 1], [], []>} : vector<16x16xf32>, vector<16x128xf32>, vector<16x128xf32> -> vector<16x128xf32>
    %30 = vector.shape_cast %29 : vector<16x128xf32> to vector<2x8x128xf32>
    %c0_16 = arith.constant 0 : index
    %c0_17 = arith.constant 0 : index
    %c0_18 = arith.constant 0 : index
    %31 = vector.load %arg5[%c0_16, %c0_17, %c0_18] : memref<2x8x128xf32, #tpu.memory_space<vmem>>, vector<2x8x128xf32>
    tpu.vector_store %arg5[%c0_16, %c0_17, %c0_18], %30 {strides = array<i32>} : memref<2x8x128xf32, #tpu.memory_space<vmem>>, vector<2x8x128xf32>,
    return
  }
  func.func @transform_0(%arg0: i32) -> (i32, i32, i32) {
    %c0_i32 = arith.constant 0 : i32
    %c0_i32_0 = arith.constant 0 : i32
    %c0_i32_1 = arith.constant 0 : i32
    return %arg0, %c0_i32, %c0_i32_0 : i32, i32, i32
  }
  func.func @transform_1(%arg0: i32) -> (i32, i32) {
    %c0_i32 = arith.constant 0 : i32
    %c0_i32_0 = arith.constant 0 : i32
    %c0_i32_1 = arith.constant 0 : i32
    return %c0_i32, %c0_i32_0 : i32, i32
  }
  func.func @transform_2(%arg0: i32) -> (i32, i32) {
    %c0_i32 = arith.constant 0 : i32
    %c0_i32_0 = arith.constant 0 : i32
    %c0_i32_1 = arith.constant 0 : i32
    return %c0_i32, %c0_i32_0 : i32, i32
  }
  func.func @transform_3(%arg0: i32) -> (i32, i32, i32) {
    %c0_i32 = arith.constant 0 : i32
    %c0_i32_0 = arith.constant 0 : i32
    %c0_i32_1 = arith.constant 0 : i32
    return %arg0, %c0_i32, %c0_i32_0 : i32, i32, i32
  }
  func.func @transform_4(%arg0: i32) -> (i32, i32, i32) {
    %c0_i32 = arith.constant 0 : i32
    %c0_i32_0 = arith.constant 0 : i32
    %c0_i32_1 = arith.constant 0 : i32
    return %arg0, %c0_i32, %c0_i32_0 : i32, i32, i32
  }
}

</mosaic_0001>

<bundles_post_ra>
// kernel: tpu_custom_call.1
= control target key start
LH: loop header
LB: loop body
LE: loop exit
PB: predicated region body
PF: predicated region fallthrough
CT: control target
= control target key end

     0   :  { %9 = vsyncpa [#allocation3], 0  ;;  %s1443_s0 = inlined_call_operand.hbm [shape: f32[4,8,128], index: 0, kind: input, shape index: {}]   ;;  %s1444_s1 = inlined_call_operand.hbm [shape: f32[128,384], index: 1, kind: input, shape index: {}]   ;;  %s1445_s2 = inlined_call_operand.vmem [shape: f32[1,384], index: 2, kind: input, shape index: {}]   ;;  %s1446_s3 = inlined_call_operand.hbm [shape: f32[2,16,16], index: 3, kind: input, shape index: {}]   ;;  %s1447_s4 = inlined_call_operand.hbm [shape: f32[4,8,128], index: 4, kind: output, shape index: {}]  }
   0x1   :  { %11 = vsyncpa [#allocation3 + $0x1], 0 }
   0x2   :  { %12 = vsyncpa [#allocation6], 0 }
   0x3   :  { %13 = vsyncpa [#allocation4], 0 }
   0x4   :  { %15 = vsyncpa [#allocation4 + $0x1], 0  ;;  %s1166_s15 = smov 0   ;;  %s1168_s16 = smov 0  }
   0x5   :  { %s1170_s17 = smov 0   ;;  %s1172_s18 = smov 0  }
   0x6 LB: > { %s1187_s19 = sadd.s32 1, %s1128_s18   ;;  %s28_s20 = sadd.s32 1, %s1124_s17  ;;  %s1128_s18 = sphi %s1172_s18, %s1467_s18   ;;  %s1124_s17 = sphi %s1170_s17, %s1466_s17   ;;  %s1120_s16 = sphi %s1168_s16, %s1465_s16   ;;  %s1116_s15 = sphi %s1166_s15, %s1464_s15  }
   0x7   : > { %s25_s21 = ssub.s32 %s1128_s18, %s1187_s19  ;;  %p35_p0 = scmp.ne.s32.totalorder %s1124_s17, %s1120_s16 }
   0x8   : > { %p26_p1 = scmp.eq.s32.totalorder %s25_s21, 0  ;;  %p36_p2 = scmp.eq.s32.totalorder %s1128_s18, 0 }
   0x9   : > { %p923_p4 = scmp.lt.s32.totalorder %s1128_s18, 2  ;;  %s175_s23 = sand.u32 1, %s1128_s18  }
   0xa   : > { %s1198_s22 = scalar_select %p26_p1, %s1124_s17, %s28_s20  }
   0xb   : > { %p37_p5 = por %p36_p2, %p35_p0  ;;  %s177_s24 = sand.u32 1, %s1124_s17  }
   0xc   : > { %s1205_s25 = sshll.u32 %s177_s24, 4  ;;  %s819_s26 = sshll.u32 %s1128_s18, 8 }
   0xd   : > { %s1213_s29 = scalar_lea.hbm %s1443_s0, %s819_s26  ;;  %s179_s30 = scalar_lea.vmem [#allocation2], %s1205_s25 }
   0xe   : > { %s186_s5 = sshll.u32 %s179_s30, 4  ;;  %p1216_p6 = pnand %p923_p4, %p37_p5  ;;  %s1220_s5 = int_to_ptr.vmem [resolvable:$true] %s186_s5 }
   0xf   : > { %s1222_s7 = scalar_lea.sflag [#allocation3], %s175_s23  ;;  %s974_s8 = scalar_lea.hbm %s1213_s29, 256 }
  0x10   : > { %p975_p7 = scmp.ne.s32.totalorder %s1213_s29, %s974_s8  ;;  %p976_p8 = pneg %p1216_p6 }
  0x11   : > { %s979_s11 = scalar_lea.hbm %s1443_s0, 512  ;;  %p980_p11 = scmp.lt.s32.totalorder %s1213_s29, %s1443_s0 }
  0x12   : > { %p977_p9 = pnand %p976_p8, %p975_p7  ;;  %p981_p12 = scmp.lt.s32.totalorder %s979_s11, %s974_s8 }
  0x14   : > { %p978_p10 = pneg %p977_p9  ;;  %p982_p13 = por %p981_p12, %p980_p11 }
  0x16   : > { %p983_p1 = pnand %p982_p13, %p978_p10 }
  0x18   : > { %986 = shalt.err (!%p983_p1)
}
  0x19   : > { %s987_s14 = scalar_lea.vmem %s1220_s5, 256  ;;  %s1130_s20 = smov [#allocation2]  }
  0x1a   : > { %p988_p2 = scmp.ne.s32.totalorder %s1220_s5, %s987_s14  ;;  %s992_s21 = sshll.u32 %s1130_s20, 4  ;;  %s993_s21 = int_to_ptr.vmem [resolvable:$false] %s992_s21 }
  0x1b   : > { %s994_s23 = scalar_lea.vmem %s993_s21, 512  ;;  %p995_p7 = scmp.lt.s32.totalorder %s1220_s5, %s993_s21 }
  0x1c   : > { %p990_p4 = pnand %p988_p2, %p976_p8  ;;  %p996_p9 = scmp.lt.s32.totalorder %s994_s23, %s987_s14 }
  0x1e   : > { %p991_p5 = pneg %p990_p4  ;;  %p997_p3 = por %p996_p9, %p995_p7 }
  0x20   : > { %p998_p11 = pnand %p997_p3, %p991_p5 }
  0x22   : > { %1001 = shalt.err (!%p998_p11)
}
  0x23   : > { %s1131_s24 = smov 128   ;;  %s1132_s27 = smov 8  }
  0x24   : > { %914 = dma.hbm_to_vmem [thread:$0]  (!%p1216_p6), %s1213_s29, 256, %s1220_s5, %s1222_s7, %s1131_s24, %s1131_s24, %s1132_s27  }
  0x25   : > { %s1257_s8 = scalar_lea.hbm %s1446_s3, %s819_s26  ;;  %s200_s9 = scalar_lea.vmem [#allocation7], %s1205_s25 }
  0x26   : > { %s207_s10 = sshll.u32 %s200_s9, 4  ;;  %s1261_s11 = sadd.s32 4294967295, %s1128_s18   ;;  %s1287_s10 = int_to_ptr.vmem [resolvable:$true] %s207_s10 }
  0x27   : > { %s797_s12 = sadd.s32 4294967294, %s1128_s18   ;;  %p41_p3 = scmp.ne.s32.totalorder %s1120_s16, %s1116_s15 }
  0x28   : > { %p1448_p10 = scmp.eq.s32.totalorder %s1261_s11, 0  ;;  %p133_p12 = scmp.eq.s32.totalorder %s1261_s11, 1 }
  0x29   : > { %p139_p13 = scmp.eq.s32.totalorder %s797_s12, 1  ;;  %p798_p2 = scmp.ge.s32.totalorder %s1128_s18, 1 }
  0x2a   : > { %p1270_p1 = por %p1448_p10, %p41_p3  ;;  %p1278_p4 = por %p133_p12, %p35_p0 }
  0x2b   : > { %p1282_p5 = por %p139_p13, %p41_p3  ;;  %p146_p7 = scmp.lt.s32.totalorder %s1128_s18, 3 }
  0x2c   : > { %s1452_s29 = scalar_select %p1270_p1, 1, 0 }
  0x2d   : > { %s1453_s25 = scalar_select %p1278_p4, 1, 0 }
  0x2e   : > { %s1454_s26 = scalar_select %p1282_p5, 1, 0 }
  0x2f   : > { %p1289_p9 = pnand %p798_p2, %p146_p7  ;;  %s1133_s13 = smov [#allocation5]  }
  0x30   : > { %s158_s14 = sshll.u32 %s1133_s13, 4  ;;  %s1002_s20 = scalar_lea.hbm %s1257_s8, 256  ;;  %s1295_s14 = int_to_ptr.vmem [resolvable:$true] %s158_s14 }
  0x31   : > { %p1003_p0 = scmp.ne.s32.totalorder %s1257_s8, %s1002_s20  ;;  %s1007_s28 = scalar_lea.hbm %s1446_s3, 512 }
  0x32   : > { %p1008_p13 = scmp.lt.s32.totalorder %s1257_s8, %s1446_s3  ;;  %p1009_p2 = scmp.lt.s32.totalorder %s1007_s28, %s1002_s20 }
  0x33   : > { %p1005_p3 = pnand %p1003_p0, %p976_p8 }
  0x34   : > { %p1010_p7 = por %p1009_p2, %p1008_p13 }
  0x35   : > { %p1006_p12 = pneg %p1005_p3 }
  0x37   : > { %p1011_p10 = pnand %p1010_p7, %p1006_p12 }
  0x39   : > { %1014 = shalt.err (!%p1011_p10)
}
  0x3a   : > { %s1015_s12 = scalar_lea.vmem %s1287_s10, 256  ;;  %s1134_s13 = smov [#allocation7]  }
  0x3b   : > { %p1016_p11 = scmp.ne.s32.totalorder %s1287_s10, %s1015_s12  ;;  %s1020_s21 = sshll.u32 %s1134_s13, 4  ;;  %s1021_s21 = int_to_ptr.vmem [resolvable:$false] %s1020_s21 }
  0x3c   : > { %s1022_s23 = scalar_lea.vmem %s1021_s21, 512  ;;  %p1023_p5 = scmp.lt.s32.totalorder %s1287_s10, %s1021_s21 }
  0x3d   : > { %p1018_p0 = pnand %p1016_p11, %p976_p8  ;;  %p1024_p4 = scmp.lt.s32.totalorder %s1022_s23, %s1015_s12 }
  0x3f   : > { %p1019_p3 = pneg %p1018_p0  ;;  %p1025_p1 = por %p1024_p4, %p1023_p5 }
  0x41   : > { %p1026_p13 = pnand %p1025_p1, %p1019_p3 }
  0x43   : > { %1029 = shalt.err (!%p1026_p13)
}
  0x44   : > { %917 = dma.hbm_to_vmem [thread:$0]  (!%p1216_p6), %s1257_s8, 256, %s1287_s10, %s1222_s7, %s1131_s24, %s1131_s24, %s1132_s27  }
  0x45   : > { %p1456_p8 = scmp.eq.s32.totalorder %s1261_s11, 0  ;;  %p1457_p10 = pneg %p1289_p9 }
  0x46   : > { %s1041_s20 = scalar_lea.vmem %s1295_s14, 6144  ;;  %p1049_p2 = scmp.lt.s32.totalorder %s1295_s14, %s1295_s14 }
  0x47   : > { %p908_p4 = pnand %p1457_p10, %p1456_p8  ;;  %p1042_p5 = scmp.ne.s32.totalorder %s1295_s14, %s1041_s20 }
  0x48   : > { %p1050_p7 = scmp.lt.s32.totalorder %s1041_s20, %s1041_s20 }
  0x49   : > { %p1032_p1 = pneg %p908_p4 }
  0x4a   : > { %p1051_p0 = por %p1050_p7, %p1049_p2 }
  0x4b   : > { %p1044_p11 = pnand %p1042_p5, %p1032_p1 }
  0x4d   : > { %p1045_p12 = pneg %p1044_p11 }
  0x4f   : > { %p1052_p3 = pnand %p1051_p0, %p1045_p12 }
  0x51   : > { %1055 = shalt.err (!%p1052_p3)
}
  0x52   : > { %s1135_s6 = smov 384   ;;  %s1136_s28 = smov 24  }
  0x53   : > { %910 = dma.hbm_to_vmem [thread:$0]  (!%p908_p4), %s1444_s1, 6144, %s1295_s14, [#allocation6], %s1135_s6, %s1135_s6, %s1136_s28  }
  0x54   : > { %219 = sbr.rel (%p1289_p9) target bundleno = 1064 (0x428), region = 36  ;;  %s221_s24 = sand.u32 (!%p1289_p9), 1, %s1261_s11  }
  0x55   : > { %s223_s27 = sand.u32 (!%p1289_p9), 1, %s1120_s16   ;;  %s222_s10 = scalar_lea.sflag (!%p1289_p9), [#allocation3], %s221_s24 }
  0x56   : > { %s1342_s8 = sshll.u32 (!%p1289_p9), %s223_s27, 4  ;;  %p1458_p6 = scmp.ne.s32.totalorder (!%p1289_p9), %s1452_s29, 0 }
  0x57   : > { %s225_s9 = scalar_lea.vmem (!%p1289_p9), [#allocation2], %s1342_s8 }
  0x59   : > { %1099 = dma.done.wait (%p1458_p6), %s222_s10, 256  }
  0x5a   : > { %1101 = vsyncadd (%p1458_p6), %s222_s10, 4294967040  ;;  %p1459_p13 = scmp.eq.s32.totalorder %s1261_s11, 0 }
  0x5c   : > { %1103 = dma.done.wait (%p1459_p13), [#allocation6], 6144   ;;  %p1460_p9 = pmov %p1459_p13 }
  0x5d   : > { %s238_s5 = scalar_lea.vmem [#allocation7], %s1342_s8 }
  0x5e   : > { %1105 = vsyncadd (%p1460_p9), [#allocation6], 4294961152 }
  0x5f   : > { %1107 = dma.done.wait (%p1458_p6), %s222_s10, 256  }
  0x60   : > { %1109 = vsyncadd (%p1458_p6), %s222_s10, 4294967040  ;;  %v1137_v0 = vmov 0.0   ;;  %v318_v1 = vld [vmem:[#allocation5 + $0x170] sm:$0xff]  ;;  %v317_v2 = vld [vmem:[#allocation5 + $0x168] sm:$0xff]  ;;  %v322_v35 = vlaneseq  ;;  %vm570_vm0 = vcmask 130048   ;;  %s267_s12 = scalar_lea.vmem [#allocation8], %s1342_s8 }
  0x61   : > { %401 = vmatprep.mubr.f32.mxu0 %v1137_v0  ;;  %v315_v3 = vld [vmem:[#allocation5 + $0x158] sm:$0xff]  ;;  %337 = vmatprep.subr.mxu0 %v318_v1  ;;  %v314_v4 = vld [vmem:[#allocation5 + $0x150] sm:$0xff]  ;;  %v312_v5 = vld [vmem:[#allocation5 + $0x140] sm:$0xff]  ;;  %s694_s13 = sshll.u32 %s267_s12, 4  ;;  %s821_s21 = sshll.u32 %s1261_s11, 8  ;;  %s1393_s13 = int_to_ptr.vmem [resolvable:$true] %s694_s13 }
  0x62   : > { %338 = vmatpush1.msra.mxu0 %v317_v2  ;;  %v311_v6 = vld [vmem:[#allocation5 + $0x138] sm:$0xff]  ;;  %v309_v7 = vld [vmem:[#allocation5 + $0x128] sm:$0xff]  ;;  %v308_v8 = vld [vmem:[#allocation5 + $0x120] sm:$0xff]  ;;  %v1367_v36 = vshrl.u32 %v322_v35, 7  ;;  %s1398_s6 = scalar_lea.hbm %s1447_s4, %s821_s21  ;;  %s1402_s28 = scalar_lea.sflag [#allocation4], %s223_s27 }
  0x63   : > { %339 = vmatprep.subr.mxu0 %v315_v3  ;;  %v306_v9 = vld [vmem:[#allocation5 + $0x110] sm:$0xff]  ;;  %v305_v10 = vld [vmem:[#allocation5 + $0x108] sm:$0xff]  ;;  %v303_v11 = vld [vmem:[#allocation5 + $0xf8] sm:$0xff]  ;;  %s1056_s30 = scalar_lea.vmem %s1393_s13, 256  ;;  %p1461_p10 = scmp.ne.s32.totalorder %s1453_s25, 0 }
  0x64   : > { %340 = vmatpush1.msra.mxu0 %v314_v4  ;;  %v302_v12 = vld [vmem:[#allocation5 + $0xf0] sm:$0xff]  ;;  %v300_v13 = vld [vmem:[#allocation5 + $0xe0] sm:$0xff]  ;;  %v299_v15 = vld [vmem:[#allocation5 + $0xd8] sm:$0xff]  ;;  %v324_v37 = vsub.s32 0, %v1367_v36  ;;  %v328_v42 = vsub.s32 1, %v1367_v36  ;;  %p1057_p8 = scmp.ne.s32.totalorder %s1393_s13, %s1056_s30  ;;  %s1138_s11 = smov [#allocation8]  }
  0x65   : > { %341 = vmatprep.subr.mxu0 %v312_v5  ;;  %v270_v14 = vld [vmem:[%s225_s9] sm:$0xff]  ;;  %v297_v16 = vld [vmem:[#allocation5 + $0xc8] sm:$0xff]  ;;  %v291_v20 = vld [vmem:[#allocation5 + $0x98] sm:$0xff]  ;;  %s1060_s7 = sshll.u32 %s1138_s11, 4  ;;  %s1061_s7 = int_to_ptr.vmem [resolvable:$false] %s1060_s7 }
  0x66   : > { %342 = vmatpush1.msra.mxu0 %v311_v6  ;;  %880 = vmatprep.mubr.f32.mxu1 %v270_v14  ;;  %v296_v17 = vld [vmem:[#allocation5 + $0xc0] sm:$0xff]  ;;  %v294_v18 = vld [vmem:[#allocation5 + $0xb0] sm:$0xff]  ;;  %v293_v19 = vld [vmem:[#allocation5 + $0xa8] sm:$0xff]  ;;  %p1058_p4 = pnand %p1057_p8, %p1461_p10  ;;  %s1062_s24 = scalar_lea.vmem %s1061_s7, 512 }
  0x67   : > { %343 = vmatprep.subr.mxu0 %v309_v7  ;;  %v290_v21 = vld [vmem:[#allocation5 + $0x90] sm:$0xff]  ;;  %v288_v22 = vld [vmem:[#allocation5 + $0x80] sm:$0xff]  ;;  %v287_v23 = vld [vmem:[#allocation5 + $0x78] sm:$0xff]  ;;  %p1063_p5 = scmp.lt.s32.totalorder %s1393_s13, %s1061_s7  ;;  %p1064_p11 = scmp.lt.s32.totalorder %s1062_s24, %s1056_s30 }
  0x68   : > { %344 = vmatpush1.msra.mxu0 %v308_v8  ;;  %v285_v24 = vld [vmem:[#allocation5 + $0x68] sm:$0xff]  ;;  %v284_v25 = vld [vmem:[#allocation5 + $0x60] sm:$0xff]  ;;  %v282_v26 = vld [vmem:[#allocation5 + $0x50] sm:$0xff]  ;;  %p1059_p1 = pneg %p1058_p4 }
  0x69   : > { %345 = vmatprep.subr.mxu0 %v306_v9  ;;  %v281_v27 = vld [vmem:[#allocation5 + $0x48] sm:$0xff]  ;;  %v279_v28 = vld [vmem:[#allocation5 + $0x38] sm:$0xff]  ;;  %v278_v29 = vld [vmem:[#allocation5 + $0x30] sm:$0xff]  ;;  %p1065_p12 = por %p1064_p11, %p1063_p5 }
  0x6a   : > { %346 = vmatpush1.msra.mxu0 %v305_v10  ;;  %v276_v30 = vld [vmem:[#allocation5 + $0x20] sm:$0xff]  ;;  %v275_v31 = vld [vmem:[#allocation5 + $0x18] sm:$0xff]  ;;  %v273_v32 = vld [vmem:[#allocation5 + $0x8] sm:$0xff] }
  0x6b   : > { %347 = vmatprep.subr.mxu0 %v303_v11  ;;  %v272_v33 = vld [vmem:[#allocation5] sm:$0xff]  ;;  %v1364_v34 = vld [vmem:[%s225_s9 + $0x8] sm:$0xff]  ;;  %v310_v53 = vld [vmem:[#allocation5 + $0x130] sm:$0xff]  ;;  %p1066_p2 = pnand %p1065_p12, %p1059_p1 }
  0x6c   : > { %348 = vmatpush1.msra.mxu0 %v302_v12  ;;  %v1373_v38 = vld [vmem:[%s1445_s2] sm:$0x7]  ;;  %v319_v50 = vld [vmem:[#allocation5 + $0x178] sm:$0xff]  ;;  %v313_v52 = vld [vmem:[#allocation5 + $0x148] sm:$0xff] }
  0x6d   : > { %349 = vmatprep.subr.mxu0 %v300_v13  ;;  %v325_v39 = vrot.slane %v1373_v38, %v324_v37  ;;  %v329_v45 = vrot.slane %v1373_v38, %v328_v42  ;;  %v316_v51 = vld [vmem:[#allocation5 + $0x160] sm:$0xff]  ;;  %848 = vmatprep.subr.mxu1 %v319_v50  ;;  %v307_v54 = vld [vmem:[#allocation5 + $0x118] sm:$0xff]  ;;  %v301_v56 = vld [vmem:[#allocation5 + $0xe8] sm:$0xff] }
  0x6e   : > { %350 = vmatpush1.msra.mxu0 %v299_v15  ;;  %849 = vmatpush3.msra.mxu1 %v319_v50  ;;  %v304_v55 = vld [vmem:[#allocation5 + $0x100] sm:$0xff]  ;;  %v298_v57 = vld [vmem:[#allocation5 + $0xd0] sm:$0xff]  ;;  %v295_v58 = vld [vmem:[#allocation5 + $0xb8] sm:$0xff] }
  0x6f   : > { %351 = vmatprep.subr.mxu0 %v297_v16  ;;  %850 = vmatprep.subr.mxu1 %v316_v51  ;;  %v292_v59 = vld [vmem:[#allocation5 + $0xa0] sm:$0xff]  ;;  %v289_v60 = vld [vmem:[#allocation5 + $0x88] sm:$0xff]  ;;  %v286_v61 = vld [vmem:[#allocation5 + $0x70] sm:$0xff] }
  0x70   : > { %352 = vmatpush1.msra.mxu0 %v296_v17  ;;  %851 = vmatpush3.msra.mxu1 %v316_v51  ;;  %v283_v62 = vld [vmem:[#allocation5 + $0x58] sm:$0xff]  ;;  %v280_v63 = vld [vmem:[#allocation5 + $0x40] sm:$0xff]  ;;  %v274_v1 = vld [vmem:[#allocation5 + $0x10] sm:$0xff] }
  0x71   : > { %353 = vmatprep.subr.mxu0 %v294_v18  ;;  %852 = vmatprep.subr.mxu1 %v313_v52  ;;  %v566_v4 = vld [vmem:[%s238_s5] sm:$0xff]  ;;  %v567_v7 = vld [vmem:[%s238_s5 + $0x8] sm:$0xff] }
  0x72   : > { %354 = vmatpush1.msra.mxu0 %v293_v19  ;;  %853 = vmatpush3.msra.mxu1 %v313_v52 }
  0x73   : > { %355 = vmatprep.subr.mxu0 %v291_v20  ;;  %854 = vmatprep.subr.mxu1 %v310_v53 }
  0x74   : > { %356 = vmatpush1.msra.mxu0 %v290_v21  ;;  %855 = vmatpush3.msra.mxu1 %v310_v53 }
  0x75   : > { %357 = vmatprep.subr.mxu0 %v288_v22  ;;  %856 = vmatprep.subr.mxu1 %v307_v54  ;;  %v332_v22 = vsub.s32 2, %v1367_v36 }
  0x76   : > { %358 = vmatpush1.msra.mxu0 %v287_v23  ;;  %857 = vmatpush3.msra.mxu1 %v307_v54 }
  0x77   : > { %359 = vmatprep.subr.mxu0 %v285_v24  ;;  %858 = vmatprep.subr.mxu1 %v304_v55  ;;  %v333_v24 = vrot.slane %v1373_v38, %v332_v22 }
  0x78   : > { %360 = vmatpush1.msra.mxu0 %v284_v25  ;;  %859 = vmatpush3.msra.mxu1 %v304_v55 }
  0x79   : > { %361 = vmatprep.subr.mxu0 %v282_v26  ;;  %860 = vmatprep.subr.mxu1 %v301_v56 }
  0x7a   : > { %362 = vmatpush1.msra.mxu0 %v281_v27  ;;  %861 = vmatpush3.msra.mxu1 %v301_v56 }
  0x7b   : > { %363 = vmatprep.subr.mxu0 %v279_v28  ;;  %862 = vmatprep.subr.mxu1 %v298_v57 }
  0x7c   : > { %364 = vmatpush1.msra.mxu0 %v278_v29  ;;  %863 = vmatpush3.msra.mxu1 %v298_v57 }
  0x7d   : > { %365 = vmatprep.subr.mxu0 %v276_v30  ;;  %864 = vmatprep.subr.mxu1 %v295_v58 }
  0x7e   : > { %366 = vmatpush1.msra.mxu0 %v275_v31  ;;  %865 = vmatpush3.msra.mxu1 %v295_v58 }
  0x7f   : > { %367 = vmatprep.subr.mxu0 %v273_v32  ;;  %866 = vmatprep.subr.mxu1 %v292_v59 }
  0x80   : > { %368 = vmatpush1.msra.mxu0 %v272_v33  ;;  %867 = vmatpush3.msra.mxu1 %v292_v59 }
  0x81   : > { %402 = vmatmul.mubr.f32.vlgmr.msra.gmra.mxu0 %v270_v14  ;;  %868 = vmatprep.subr.mxu1 %v289_v60 }
  0x82   : > { %407 = vmatprep.mubr.f32.mxu0 %v1137_v0  ;;  %869 = vmatpush3.msra.mxu1 %v289_v60  ;;  %v277_v0 = vld [vmem:[#allocation5 + $0x28] sm:$0xff] }
  0x83   : > { %870 = vmatprep.subr.mxu1 %v286_v61 }
  0x84   : > { %871 = vmatpush3.msra.mxu1 %v286_v61 }
  0x85   : > { %408 = vmatmul.mubr.f32.gmra.mxu0 %v1364_v34  ;;  %872 = vmatprep.subr.mxu1 %v283_v62 }
  0x86   : > { %873 = vmatpush3.msra.mxu1 %v283_v62 }
  0x87   : > { %874 = vmatprep.subr.mxu1 %v280_v63 }
  0x88   : > { %875 = vmatpush3.msra.mxu1 %v280_v63 }
  0x89   : > { %876 = vmatprep.subr.mxu1 %v277_v0 }
  0x8a   : > { %877 = vmatpush3.msra.mxu1 %v277_v0 }
  0x8b   : > { %878 = vmatprep.subr.mxu1 %v274_v1 }
  0x8c   : > { %879 = vmatpush3.msra.mxu1 %v274_v1 }
  0x8d   : > { %881 = vmatmul.mubr.f32.vlgmr.msra.gmra.mxu1 %v1364_v34 }
 0x141   : > { %v403_v40 = vpop.f32.mrf.mxu0 }
 0x142   : > { %v404_v41 = vadd.f32 %v403_v40, %v325_v39 }
 0x143   : > { %v405_v43 = vpop.f32.mrf.mxu0 }
 0x144   : > { %887 = vmatprep.mubr.f32.mxu0 %v404_v41  ;;  %v406_v48 = vadd.f32 %v405_v43, %v329_v45 }
 0x145   : > { %v409_v44 = vpop.f32.mrf.mxu0 }
 0x146   : > { %v410_v49 = vadd.f32 %v409_v44, %v325_v39 }
 0x147   : > { %v411_v46 = vpop.f32.mrf.mxu0 }
 0x148   : > { %v412_v47 = vadd.f32 %v411_v46, %v329_v45 }
 0x14a   : > { %883 = vmatprep.subr.mxu0 %v412_v47 }
 0x14b   : > { %884 = vmatpush3.xpose.msra.mxu0 %v412_v47 }
 0x14c   : > { %885 = vmatprep.subr.mxu0 %v406_v48 }
 0x14d   : > { %v882_v23 = vpop.f32.mrf.mxu1 }
 0x14e   : > { %v486_v26 = vadd.f32 %v882_v23, %v333_v24 }
 0x14f   : > { %886 = vmatpush3.xpose.msra.mxu0 %v406_v48  ;;  %v480_v25 = vpop.f32.mrf.mxu1 }
 0x150   : > { %v481_v27 = vadd.f32 %v480_v25, %v333_v24  ;;  %890 = vmatprep.subr.mxu1 %v486_v26 }
 0x151   : > { %891 = vmatpush3.msra.mxu1 %v486_v26 }
 0x152   : > { %888 = vmatmul.mubr.f32.vlgmr.msra.gmra.mxu0 %v410_v49  ;;  %892 = vmatprep.subr.mxu1 %v481_v27 }
 0x153   : > { %893 = vmatpush3.msra.mxu1 %v481_v27 }
 0x212   : > { %v889_v2 = vpop.f32.mrf.mxu0 }
 0x213   : > { %v565_v5 = vmul.f32 0.088388346, %v889_v2 }
 0x214   : > { %v555_v3 = vpop.f32.mrf.mxu0 }
 0x215   : > { %v564_v6 = vmul.f32 0.088388346, %v555_v3  ;;  %v569_v10 = vadd.f32 %v567_v7, %v565_v5 }
 0x217   : > { %v568_v8 = vadd.f32 %v566_v4, %v564_v6  ;;  %v574_v11 = vsel %vm570_vm0, %v569_v10, -inf }
 0x219   : > { %v571_v9 = vsel %vm570_vm0, %v568_v8, -inf }
 0x21a   : > { %572 = vmax.xlane.f32.xlu0 %v571_v9 }
 0x21e   : > { %575 = vmax.xlane.f32.xlu0 %v574_v11 }
 0x2a3   : > { %v573_v12 = vpop.xlane.xlu0 %572 }
 0x2a4   : > { %v577_v13 = vsub.f32 %v568_v8, %v573_v12 }
 0x2a6   : > { %v579_v14 = vmul.f32 1.442695, %v577_v13 }
 0x2a7   : > { %v576_v15 = vpop.xlane.xlu0 %575 }
 0x2a8   : > { %966 = vpow2.f32 %v579_v14  ;;  %v578_v16 = vsub.f32 %v569_v10, %v576_v15 }
 0x2aa   : > { %v581_v17 = vmul.f32 1.442695, %v578_v16 }
 0x2ac   : > { %968 = vpow2.f32 %v581_v17 }
 0x2b5   : > { %v967_v18 = vpop.eup %966 }
 0x2b6   : > { %v583_v19 = vsel %vm570_vm0, %v967_v18, 0.0 }
 0x2b7   : > { %584 = vadd.xlane.f32.xlu1 %v583_v19 }
 0x2b9   : > { %v969_v20 = vpop.eup %968 }
 0x2ba   : > { %v586_v21 = vsel %vm570_vm0, %v969_v20, 0.0 }
 0x2bb   : > { %587 = vadd.xlane.f32.xlu1 %v586_v21 }
 0x340   : > { %v585_v28 = vpop.xlane.xlu1 %584 }
 0x341   : > { %970 = vrcp.f32 %v585_v28 }
 0x344   : > { %v588_v29 = vpop.xlane.xlu1 %587 }
 0x345   : > { %972 = vrcp.f32 %v588_v29 }
 0x34e   : > { %v971_v30 = vpop.eup %970 }
 0x34f   : > { %v590_v31 = vmul.f32 %v971_v30, %v967_v18 }
 0x351   : > { %vm593_vm1 = vcmp.lt.f32.partialorder %v590_v31, 0.1 }
 0x352   : > { %v973_v32 = vpop.eup %972  ;;  %v595_v33 = vsel %vm593_vm1, 0.0, %v590_v31 }
 0x353   : > { %894 = vmatprep.mubr.msk.f32.mxu1 %vm570_vm0, %v595_v33  ;;  %v592_v34 = vmul.f32 %v973_v32, %v969_v20 }
 0x355   : > { %vm594_vm2 = vcmp.lt.f32.partialorder %v592_v34, 0.1 }
 0x356   : > { %v596_v35 = vsel %vm594_vm2, 0.0, %v592_v34 }
 0x357   : > { %895 = vmatmul.mubr.msk.f32.vlgmr.msra.gmra.mxu1 %vm570_vm0, %v596_v35 }
 0x417   : > { %v896_v36 = vpop.f32.mrf.mxu1 }
 0x418   : > { %679 = vst [vmem:[%s267_s12 + $0x8] sm:$0xff] %v896_v36 }
 0x419   : > { %v669_v37 = vpop.f32.mrf.mxu1 }
 0x41a   : > { %678 = vst [vmem:[%s267_s12] sm:$0xff] %v669_v37 }
 0x41b   : > { %1069 = shalt.err (!%p1066_p2)
}
 0x41c   : > { %s1070_s27 = scalar_lea.hbm %s1398_s6, 256  ;;  %s1074_s9 = scalar_lea.hbm %s1447_s4, 512 }
 0x41d   : > { %p1071_p7 = scmp.ne.s32.totalorder %s1398_s6, %s1070_s27  ;;  %p1075_p6 = scmp.lt.s32.totalorder %s1398_s6, %s1447_s4 }
 0x41e   : > { %p1076_p13 = scmp.lt.s32.totalorder %s1074_s9, %s1070_s27 }
 0x41f   : > { %p1072_p0 = pnand %p1071_p7, %p1461_p10 }
 0x420   : > { %p1077_p9 = por %p1076_p13, %p1075_p6 }
 0x421   : > { %p1073_p3 = pneg %p1072_p0 }
 0x423   : > { %p1078_p8 = pnand %p1077_p9, %p1073_p3 }
 0x425   : > { %1081 = shalt.err (!%p1078_p8)
}
 0x426   : > { %s1139_s14 = smov 128   ;;  %s1140_s12 = smov 8  }
 0x427   : > { %905 = dma.vmem_to_hbm [thread:$0]  (%p1461_p10), %s1393_s13, 256, %s1398_s6, %s1402_s28, %s1139_s14, %s1139_s14, %s1140_s12  }
 0x428 PF: > { %s709_s21 = sand.u32 1, %s1116_s15   ;;  %p1462_p4 = scmp.ne.s32.totalorder %s1454_s26, 0 }
 0x429   : > { %p1463_p1 = scmp.ge.s32.totalorder %s1128_s18, 2  ;;  %s710_s23 = scalar_lea.sflag [#allocation4], %s709_s21 }
 0x42b   : > { %p919_p5 = pnand %p1463_p1, %p1462_p4 }
 0x42d   : > { %p920_p11 = pneg %p919_p5 }
 0x42f   : > { %1111 = dma.done.wait (%p920_p11), %s710_s23, 256  }
 0x430   : > { %1113 = vsyncadd (%p920_p11), %s710_s23, 4294967040  ;;  %p18_p12 = scmp.ge.s32.totalorder %s1187_s19, 4   ;;  %s1464_s15 = smov %s1120_s16 }
 0x431   : > { %s1465_s16 = smov %s1124_s17  ;;  %s1466_s17 = smov %s1198_s22 }
 0x432   : > { %s1467_s18 = smov %s1187_s19  ;;  %20 = sbr.rel (!%p18_p12) target bundleno = 6 (0x6), region = 96 }
 0x437   :  { %715 = vsyncpa [#allocation3], 1 }
 0x438   :  { %717 = vsyncpa [#allocation3 + $0x1], 1 }
 0x439   :  { %718 = vsyncpa [#allocation6], 1 }
 0x43a   :  { %719 = vsyncpa [#allocation4], 1 }
 0x43b   :  { %721 = vsyncpa [#allocation4 + $0x1], 1 }

</bundles_post_ra>
